<compile_context>
chip_gen: v5e
topology: v5e:2x2
jax: 0.10.0
libtpu: 0.0.40
codegen_flags: <defaults>
</compile_context>

<pallas_src>
import jax
import jax.numpy as jnp
from jax import lax
from jax.experimental import pallas as pl
from jax.experimental.pallas import tpu as pltpu

# f32 parity with a true f32 nn.Linear. Use lax.Precision.DEFAULT (or bf16
# inputs) knowingly if reduced precision is acceptable — large speed/bandwidth
# win on the bf16-native MXU.
_MATMUL_PRECISION = lax.Precision.HIGHEST


def _round_up(x: int, m: int) -> int:
    return ((x + m - 1) // m) * m


def _largest_divisor(total: int, unit: int, cap: int) -> int:
    """Largest multiple of `unit` that divides `total` and is <= cap."""
    best = unit
    d = unit
    limit = min(total, cap)
    while d <= limit:
        if total % d == 0:
            best = d
        d += unit
    return best


def _vmem_capacity_bytes() -> int:
    try:
        return int(pltpu.get_tpu_info().vmem_capacity_bytes)
    except Exception:
        # Conservative fallback: v7x per-TensorCore VMEM.
        return 64 * 1024 * 1024


def _pick_tiles(b_pad: int, n_pad: int, k_pad: int,
                in_itemsize: int, budget_bytes: int):
    """Pick (tm, tn, tk): tiles divide padded dims, footprint under budget."""
    # Small-batch (GEMV-like) regime: keep all of B resident, stream W once.
    tm = _largest_divisor(b_pad, 8, 512)

    for tn_cap, tk_cap in [(1024, 2048), (1024, 1024), (512, 1024),
                           (512, 512), (256, 512), (256, 256),
                           (128, 256), (128, 128)]:
        tn = _largest_divisor(n_pad, 128, tn_cap)
        tk = _largest_divisor(k_pad, 128, tk_cap)
        live = (2 * (tm * tk + tn * tk) * in_itemsize   # double-buffered x, W
                + 2 * tm * tn * 4                       # double-buffered output
                + 2 * tn * 4)                           # bias tile
        if live <= budget_bytes:
            break
    else:
        tn, tk = 128, 128

    # Megacore (v7x, 2 TCs): make sure at least one "parallel" axis has >= 2
    # blocks when the problem allows it.
    if b_pad // tm == 1 and n_pad // tn == 1 and n_pad >= 256:
        tn = _largest_divisor(n_pad, 128, max(128, n_pad // 2))

    return tm, tn, tk


def linear_kernel(x_ref, w_ref, b_ref, o_ref):
    # x_ref: (tm, tk)   w_ref: (tn, tk)   b_ref: (1, tn)   o_ref: (tm, tn) f32
    # NOTE: init/finalize gating is only correct because K (axis 2) is the
    # innermost, fastest-varying grid axis and the output tile stays resident.
    k = pl.program_id(2)

    @pl.when(k == 0)
    def _init():
        o_ref[...] = jnp.zeros_like(o_ref)

    # Contract x's K axis against W's K axis — no transposed copy of W is
    # materialized; the MXU consumes the transposed RHS form directly.
    o_ref[...] += lax.dot_general(
        x_ref[...], w_ref[...],
        dimension_numbers=(((1,), (1,)), ((), ())),
        preferred_element_type=jnp.float32,
        precision=_MATMUL_PRECISION)

    @pl.when(k == pl.num_programs(2) - 1)
    def _finalize():
        # Bias added exactly once, after the full K reduction.
        o_ref[...] += b_ref[...]


def prepare_linear_params(w, b):
    """One-time (load-time) padding of nn.Linear parameters to lane multiples.

    Keeps the per-call forward free of any HBM read+write of the full weight
    matrix for padding.
    """
    n_out, k_in = w.shape
    n_pad = _round_up(n_out, 128)
    k_pad = _round_up(k_in, 128)
    w_p = jnp.pad(w, ((0, n_pad - n_out), (0, k_pad - k_in)))
    b_p = jnp.pad(b, (0, n_pad - n_out)).reshape(1, n_pad)
    return w_p, b_p, n_out, k_in


def linear_net_forward(x, w_p, b_p, n_out, k_in):
    """y = x @ W.T + b, with (w_p, b_p) already padded by prepare_linear_params."""
    B, K = x.shape
    assert K == k_in, "input feature dim mismatch"
    n_pad, k_pad = w_p.shape

    b_pad = _round_up(B, 8)

    # ---- generation-aware VMEM budget --------------------------------------
    vmem_cap = _vmem_capacity_bytes()
    # ~48 MiB limit on v7x (64 MiB VMEM), ~96-100 MiB on v5e/v6e (128 MiB).
    vmem_limit = min(int(vmem_cap * 0.75), 100 * 1024 * 1024)
    tile_budget = int(vmem_limit * 0.75)   # headroom for compiler scratch

    tm, tn, tk = _pick_tiles(b_pad, n_pad, k_pad,
                             jnp.dtype(x.dtype).itemsize, tile_budget)

    # Only the (cheap, activation-sized) input is padded per call.
    if b_pad != B or k_pad != K:
        x_p = jnp.pad(x, ((0, b_pad - B), (0, k_pad - K)))
    else:
        x_p = x

    grid = (b_pad // tm, n_pad // tn, k_pad // tk)

    out_padded = pl.pallas_call(
        linear_kernel,
        out_shape=jax.ShapeDtypeStruct((b_pad, n_pad), jnp.float32),
        grid_spec=pltpu.PrefetchScalarGridSpec(
            num_scalar_prefetch=0,
            grid=grid,
            in_specs=[
                pl.BlockSpec((tm, tk), lambda i, j, k: (i, k)),   # x
                pl.BlockSpec((tn, tk), lambda i, j, k: (j, k)),   # W (N, K)
                pl.BlockSpec((1, tn), lambda i, j, k: (0, j)),    # bias
            ],
            out_specs=pl.BlockSpec((tm, tn), lambda i, j, k: (i, j)),
        ),
        compiler_params=pltpu.CompilerParams(
            dimension_semantics=("parallel", "parallel", "arbitrary"),
            vmem_limit_bytes=vmem_limit,
        ),
    )(x_p, w_p, b_p)

    if b_pad != B or n_pad != n_out:
        return out_padded[:B, :n_out]
    return out_padded


if __name__ == "__main__":
    # Small shapes consistent with LinearNet(input_dim, output_dim).
    B, input_dim, output_dim = 8, 32, 16

    key = jax.random.PRNGKey(0)
    kx, kw, kb = jax.random.split(key, 3)

    x = jax.random.normal(kx, (B, input_dim), dtype=jnp.float32)
    # Deterministic parameter init (mimics nn.Linear's uniform range scale).
    bound = 1.0 / (input_dim ** 0.5)
    w = jax.random.uniform(kw, (output_dim, input_dim), dtype=jnp.float32,
                           minval=-bound, maxval=bound)
    b = jax.random.uniform(kb, (output_dim,), dtype=jnp.float32,
                           minval=-bound, maxval=bound)

    # One-time parameter preparation (outside the hot path).
    w_p, b_p, n_out, k_in = prepare_linear_params(w, b)

    y = linear_net_forward(x, w_p, b_p, n_out, k_in)
    jax.block_until_ready(y)

    # Cross-check against plain JAX reference.
    y_ref = x @ w.T + b
    assert y.shape == (B, output_dim)
    assert jnp.allclose(y, y_ref, atol=1e-5, rtol=1e-5)

    print("KERNEL_OK")
</pallas_src>

<mosaic_0001>
module attributes {stable_mosaic.version = 11 : i64} {
  func.func @linear_kernel(%arg0: i32, %arg1: i32, %arg2: i32, %arg3: memref<8x128xf32, #tpu.memory_space<vmem>>, %arg4: memref<128x128xf32, #tpu.memory_space<vmem>>, %arg5: memref<1x128xf32, #tpu.memory_space<vmem>>, %arg6: memref<8x128xf32, #tpu.memory_space<vmem>>) attributes {dimension_semantics = [#tpu.dimension_semantics<parallel>, #tpu.dimension_semantics<parallel>, #tpu.dimension_semantics<arbitrary>], iteration_bounds = array<i64: 1, 1, 1>, scalar_prefetch = 0 : i64, scratch_operands = 0 : i64, tpu.core_type = #tpu.core_type<tc>, window_params = [{transform_indices = @transform_0, window_bounds = array<i64: 8, 128>}, {transform_indices = @transform_1, window_bounds = array<i64: 128, 128>}, {transform_indices = @transform_2, window_bounds = array<i64: 1, 128>}, {transform_indices = @transform_3, window_bounds = array<i64: 8, 128>}]} {
    %c0_i32 = arith.constant 0 : i32
    %0 = arith.cmpi eq, %arg2, %c0_i32 : i32
    %1 = arith.extui %0 : i1 to i32
    %c0_i32_0 = arith.constant 0 : i32
    %2 = arith.cmpi ne, %1, %c0_i32_0 : i32
    scf.if %2 {
      %cst_10 = arith.constant 0.000000e+00 : f32
      %12 = vector.broadcast %cst_10 : f32 to vector<8x128xf32>
      %c0_11 = arith.constant 0 : index
      %c0_12 = arith.constant 0 : index
      %13 = vector.load %arg6[%c0_11, %c0_12] : memref<8x128xf32, #tpu.memory_space<vmem>>, vector<8x128xf32>
      tpu.vector_store %arg6[%c0_11, %c0_12], %12 {strides = array<i32>} : memref<8x128xf32, #tpu.memory_space<vmem>>, vector<8x128xf32>,
    } else {
    }
    %c0 = arith.constant 0 : index
    %c0_1 = arith.constant 0 : index
    %3 = vector.load %arg6[%c0, %c0_1] : memref<8x128xf32, #tpu.memory_space<vmem>>, vector<8x128xf32>
    %c0_2 = arith.constant 0 : index
    %c0_3 = arith.constant 0 : index
    %4 = vector.load %arg3[%c0_2, %c0_3] : memref<8x128xf32, #tpu.memory_space<vmem>>, vector<8x128xf32>
    %c0_4 = arith.constant 0 : index
    %c0_5 = arith.constant 0 : index
    %5 = vector.load %arg4[%c0_4, %c0_5] : memref<128x128xf32, #tpu.memory_space<vmem>>, vector<128x128xf32>
    %cst = arith.constant dense<0.000000e+00> : vector<8x128xf32>
    %6 = tpu.matmul %4, %5, %cst {dimension_numbers = #tpu.dot_dimension_numbers<[1], [1], [0], [0], [0, 0, 1, 0], [], []>, precision = #tpu.contract_precision<fp32>} : vector<8x128xf32>, vector<128x128xf32>, vector<8x128xf32> -> vector<8x128xf32>
    %7 = arith.addf %3, %6 : vector<8x128xf32>
    %c0_6 = arith.constant 0 : index
    %c0_7 = arith.constant 0 : index
    %8 = vector.load %arg6[%c0_6, %c0_7] : memref<8x128xf32, #tpu.memory_space<vmem>>, vector<8x128xf32>
    tpu.vector_store %arg6[%c0_6, %c0_7], %7 {strides = array<i32>} : memref<8x128xf32, #tpu.memory_space<vmem>>, vector<8x128xf32>,
    %c0_i32_8 = arith.constant 0 : i32
    %9 = arith.cmpi eq, %arg2, %c0_i32_8 : i32
    %10 = arith.extui %9 : i1 to i32
    %c0_i32_9 = arith.constant 0 : i32
    %11 = arith.cmpi ne, %10, %c0_i32_9 : i32
    scf.if %11 {
      %c0_10 = arith.constant 0 : index
      %c0_11 = arith.constant 0 : index
      %12 = vector.load %arg6[%c0_10, %c0_11] : memref<8x128xf32, #tpu.memory_space<vmem>>, vector<8x128xf32>
      %c0_12 = arith.constant 0 : index
      %c0_13 = arith.constant 0 : index
      %13 = vector.load %arg5[%c0_12, %c0_13] : memref<1x128xf32, #tpu.memory_space<vmem>>, vector<1x128xf32>
      %14 = vector.broadcast %13 : vector<1x128xf32> to vector<8x128xf32>
      %15 = arith.addf %12, %14 : vector<8x128xf32>
      %c0_14 = arith.constant 0 : index
      %c0_15 = arith.constant 0 : index
      %16 = vector.load %arg6[%c0_14, %c0_15] : memref<8x128xf32, #tpu.memory_space<vmem>>, vector<8x128xf32>
      tpu.vector_store %arg6[%c0_14, %c0_15], %15 {strides = array<i32>} : memref<8x128xf32, #tpu.memory_space<vmem>>, vector<8x128xf32>,
    } else {
    }
    return
  }
  func.func @transform_0(%arg0: i32, %arg1: i32, %arg2: i32) -> (i32, i32) {
    %c0_i32 = arith.constant 0 : i32
    return %arg0, %arg2 : i32, i32
  }
  func.func @transform_1(%arg0: i32, %arg1: i32, %arg2: i32) -> (i32, i32) {
    %c0_i32 = arith.constant 0 : i32
    return %arg1, %arg2 : i32, i32
  }
  func.func @transform_2(%arg0: i32, %arg1: i32, %arg2: i32) -> (i32, i32) {
    %c0_i32 = arith.constant 0 : i32
    %c0_i32_0 = arith.constant 0 : i32
    return %c0_i32, %arg1 : i32, i32
  }
  func.func @transform_3(%arg0: i32, %arg1: i32, %arg2: i32) -> (i32, i32) {
    %c0_i32 = arith.constant 0 : i32
    return %arg0, %arg1 : i32, i32
  }
}

</mosaic_0001>

<bundles_post_ra>
// kernel: tpu_custom_call.1
= control target key start
LH: loop header
LB: loop body
LE: loop exit
PB: predicated region body
PF: predicated region fallthrough
CT: control target
= control target key end

     0   :  { %8 = vsyncpa [#allocation3], 0  ;;  %s788_s0 = inlined_call_operand.hbm [shape: f32[8,128], index: 0, kind: input, shape index: {}]   ;;  %s789_s1 = inlined_call_operand.hbm [shape: f32[128,128], index: 1, kind: input, shape index: {}]   ;;  %s790_s2 = inlined_call_operand.vmem [shape: f32[1,128], index: 2, kind: input, shape index: {}]   ;;  %s791_s3 = inlined_call_operand.hbm [shape: f32[8,128], index: 3, kind: output, shape index: {}]  }
   0x1   :  { %9 = vsyncpa [#allocation6], 0 }
   0x2   :  { %10 = vsyncpa [#allocation4], 0  ;;  %s16_s14 = sshll.u32 %s788_s0, 4  ;;  %s524_s15 = smov [#allocation2]   ;;  %s17_s14 = int_to_ptr.hbm [resolvable:$true] %s16_s14 }
   0x3   :  { %s18_s16 = sshll.u32 %s524_s15, 4  ;;  %s26_s19 = sshll.u32 %s789_s1, 4  ;;  %s19_s16 = int_to_ptr.vmem [resolvable:$true] %s18_s16  ;;  %s27_s19 = int_to_ptr.hbm [resolvable:$true] %s26_s19 }
   0x4   :  { %21 = dma.hbm_to_vmem [thread:$0]  %s17_s14, 128, %s19_s16, [#allocation3]  }
   0x5   :  { %s525_s20 = smov [#allocation5]   ;;  %s526_s22 = smov 128  }
   0x6   :  { %s28_s21 = sshll.u32 %s525_s20, 4  ;;  %s527_s23 = smov 8   ;;  %s29_s21 = int_to_ptr.vmem [resolvable:$true] %s28_s21 }
   0x7   :  { %34 = dma.hbm_to_vmem [thread:$0]  %s27_s19, 2048, %s29_s21, [#allocation6], %s526_s22, %s526_s22, %s527_s23  }
   0x8   :  { %518 = dma.done.wait [#allocation3], 128  }
   0x9   :  { %519 = vsyncadd [#allocation3], 4294967168 }
   0xa   :  { %520 = dma.done.wait [#allocation6], 2048  }
   0xb   :  { %521 = vsyncadd [#allocation6], 4294965248  ;;  %v67_v0 = vld [vmem:[#allocation5 + $0x78] sm:$0xff]  ;;  %v66_v1 = vld [vmem:[#allocation5 + $0x70] sm:$0xff]  ;;  %s528_s24 = smov [#allocation7]   ;;  %s428_s28 = sshll.u32 %s791_s3, 4  ;;  %s429_s28 = int_to_ptr.hbm [resolvable:$true] %s428_s28 }
   0xc   :  { %v65_v2 = vld [vmem:[#allocation5 + $0x68] sm:$0xff]  ;;  %v555_v3 = vand.u32 4294901760, %v67_v0  ;;  %v557_v4 = vand.u32 4294901760, %v66_v1  ;;  %v64_v6 = vld [vmem:[#allocation5 + $0x60] sm:$0xff]  ;;  %v63_v11 = vld [vmem:[#allocation5 + $0x58] sm:$0xff]  ;;  %s426_s25 = sshll.u32 %s528_s24, 4  ;;  %s427_s25 = int_to_ptr.vmem [resolvable:$true] %s426_s25 }
   0xd   :  { %v559_v5 = vand.u32 4294901760, %v65_v2  ;;  %v568_v9 = vand.u32 4294901760, %v64_v6  ;;  %v577_v14 = vand.u32 4294901760, %v63_v11  ;;  %v62_v19 = vld [vmem:[#allocation5 + $0x50] sm:$0xff]  ;;  %v61_v26 = vld [vmem:[#allocation5 + $0x48] sm:$0xff]  ;;  %v60_v32 = vld [vmem:[#allocation5 + $0x40] sm:$0xff] }
   0xe   :  { %69 = vmatpush.xpose.msra.mxu0 %v555_v3  ;;  %v563_v7 = vsub.f32 %v67_v0, %v555_v3  ;;  %v566_v8 = vsub.f32 %v66_v1, %v557_v4  ;;  %265 = vmatpush.xpose.msra.mxu3 %v555_v3  ;;  %v592_v21 = vand.u32 4294901760, %v62_v19  ;;  %v604_v27 = vand.u32 4294901760, %v61_v26  ;;  %v59_v38 = vld [vmem:[#allocation5 + $0x38] sm:$0xff]  ;;  %v58_v44 = vld [vmem:[#allocation5 + $0x30] sm:$0xff]  ;;  %v57_v50 = vld [vmem:[#allocation5 + $0x28] sm:$0xff] }
   0xf   :  { %v571_v10 = vsub.f32 %v65_v2, %v559_v5  ;;  %v588_v18 = vsub.f32 %v64_v6, %v568_v9  ;;  %v600_v25 = vsub.f32 %v63_v11, %v577_v14  ;;  %v624_v37 = vand.u32 4294901760, %v60_v32  ;;  %v56_v56 = vld [vmem:[#allocation5 + $0x20] sm:$0xff]  ;;  %v55_v62 = vld [vmem:[#allocation5 + $0x18] sm:$0xff]  ;;  %v54_v11 = vld [vmem:[#allocation5 + $0x10] sm:$0xff] }
  0x10   :  { %v111_v12 = vand.u32 4294901760, %v563_v7  ;;  %v117_v13 = vand.u32 4294901760, %v566_v8  ;;  %212 = vmatpush.xpose.msra.mxu2 %v563_v7  ;;  %v612_v31 = vsub.f32 %v62_v19, %v592_v21  ;;  %v617_v33 = vsub.f32 %v61_v26, %v604_v27 }
  0x11   :  { %v123_v17 = vand.u32 4294901760, %v571_v10  ;;  %v129_v24 = vand.u32 4294901760, %v588_v18  ;;  %v135_v30 = vand.u32 4294901760, %v600_v25  ;;  %v633_v42 = vand.u32 4294901760, %v59_v38 }
  0x12   :  { %71 = vmatpush.xpose.msra.mxu0 %v557_v4  ;;  %v112_v15 = vsub.f32 %v563_v7, %v111_v12  ;;  %v118_v16 = vsub.f32 %v566_v8, %v117_v13  ;;  %267 = vmatpush.xpose.msra.mxu3 %v557_v4  ;;  %v141_v36 = vand.u32 4294901760, %v612_v31  ;;  %v147_v39 = vand.u32 4294901760, %v617_v33  ;;  %v51_v7 = vld [vmem:[#allocation2] sm:$0xff] }
  0x13   :  { %v124_v23 = vsub.f32 %v571_v10, %v123_v17  ;;  %v130_v29 = vsub.f32 %v588_v18, %v129_v24  ;;  %v136_v35 = vsub.f32 %v600_v25, %v135_v30  ;;  %v636_v43 = vsub.f32 %v60_v32, %v624_v37 }
  0x14   :  { %v113_v20 = vand.u32 4294901760, %v112_v15  ;;  %215 = vmatpush.xpose.msra.mxu2 %v566_v8  ;;  %v119_v22 = vand.u32 4294901760, %v118_v16  ;;  %v142_v41 = vsub.f32 %v612_v31, %v141_v36  ;;  %v148_v45 = vsub.f32 %v617_v33, %v147_v39 }
  0x15   :  { %v125_v28 = vand.u32 4294901760, %v124_v23  ;;  %v131_v34 = vand.u32 4294901760, %v130_v29  ;;  %v137_v40 = vand.u32 4294901760, %v136_v35  ;;  %v153_v47 = vand.u32 4294901760, %v636_v43  ;;  %v53_v23 = vld [vmem:[#allocation5 + $0x8] sm:$0xff]  ;;  %v52_v35 = vld [vmem:[#allocation5] sm:$0xff] }
  0x16   :  { %114 = vmatpush.xpose.msra.mxu1 %v113_v20  ;;  %73 = vmatpush.xpose.msra.mxu0 %v559_v5  ;;  %v143_v46 = vand.u32 4294901760, %v142_v41  ;;  %v645_v48 = vand.u32 4294901760, %v58_v44  ;;  %v648_v49 = vsub.f32 %v59_v38, %v633_v42  ;;  %v149_v51 = vand.u32 4294901760, %v148_v45 }
  0x17   :  { %269 = vmatpush.xpose.msra.mxu3 %v559_v5  ;;  %v154_v52 = vsub.f32 %v636_v43, %v153_v47  ;;  %v657_v54 = vand.u32 4294901760, %v57_v50  ;;  %v664_v57 = vand.u32 4294901760, %v56_v56  ;;  %v684_v6 = vand.u32 4294901760, %v55_v62 }
  0x18   :  { %218 = vmatpush.xpose.msra.mxu2 %v571_v10  ;;  %v159_v53 = vand.u32 4294901760, %v648_v49  ;;  %v660_v55 = vsub.f32 %v58_v44, %v645_v48  ;;  %v693_v20 = vand.u32 4294901760, %v54_v11  ;;  %v705_v32 = vand.u32 4294901760, %v53_v23 }
  0x19   :  { %v155_v58 = vand.u32 4294901760, %v154_v52  ;;  %v672_v61 = vsub.f32 %v57_v50, %v657_v54  ;;  %v677_v63 = vsub.f32 %v56_v56, %v664_v57  ;;  %v717_v44 = vand.u32 4294901760, %v52_v35 }
  0x1a   :  { %120 = vmatpush.xpose.msra.mxu1 %v119_v22  ;;  %75 = vmatpush.xpose.msra.mxu0 %v568_v9  ;;  %v160_v59 = vsub.f32 %v648_v49, %v159_v53  ;;  %v165_v60 = vand.u32 4294901760, %v660_v55  ;;  %v696_v22 = vsub.f32 %v55_v62, %v684_v6  ;;  %v720_v45 = vsub.f32 %v53_v23, %v705_v32 }
  0x1b   :  { %271 = vmatpush.xpose.msra.mxu3 %v568_v9  ;;  %v171_v2 = vand.u32 4294901760, %v672_v61  ;;  %v177_v15 = vand.u32 4294901760, %v677_v63  ;;  %v200_v52 = vsub.f32 %v52_v35, %v717_v44 }
  0x1c   :  { %221 = vmatpush.xpose.msra.mxu2 %v588_v18  ;;  %v161_v0 = vand.u32 4294901760, %v160_v59  ;;  %v166_v1 = vsub.f32 %v660_v55, %v165_v60  ;;  %v183_v29 = vand.u32 4294901760, %v696_v22 }
  0x1d   :  { %v172_v19 = vsub.f32 %v672_v61, %v171_v2  ;;  %v178_v26 = vsub.f32 %v677_v63, %v177_v15  ;;  %v201_v59 = vand.u32 4294901760, %v200_v52 }
  0x1e   :  { %126 = vmatpush.xpose.msra.mxu1 %v125_v28  ;;  %77 = vmatpush.xpose.msra.mxu0 %v577_v14  ;;  %v167_v16 = vand.u32 4294901760, %v166_v1 }
  0x1f   :  { %273 = vmatpush.xpose.msra.mxu3 %v577_v14  ;;  %v173_v28 = vand.u32 4294901760, %v172_v19  ;;  %v179_v38 = vand.u32 4294901760, %v178_v26 }
  0x20   :  { %224 = vmatpush.xpose.msra.mxu2 %v600_v25 }
  0x22   :  { %132 = vmatpush.xpose.msra.mxu1 %v131_v34  ;;  %79 = vmatpush.xpose.msra.mxu0 %v592_v21  ;;  %v708_v34 = vsub.f32 %v54_v11, %v693_v20 }
  0x23   :  { %275 = vmatpush.xpose.msra.mxu3 %v592_v21 }
  0x24   :  { %227 = vmatpush.xpose.msra.mxu2 %v612_v31  ;;  %v189_v41 = vand.u32 4294901760, %v708_v34  ;;  %v445_v31 = vld [vmem:[%s790_s2] ss:$0 sm:$0xff] }
  0x26   :  { %138 = vmatpush.xpose.msra.mxu1 %v137_v40  ;;  %81 = vmatpush.xpose.msra.mxu0 %v604_v27  ;;  %v184_v40 = vsub.f32 %v696_v22, %v183_v29  ;;  %v190_v50 = vsub.f32 %v708_v34, %v189_v41 }
  0x27   :  { %277 = vmatpush.xpose.msra.mxu3 %v604_v27 }
  0x28   :  { %230 = vmatpush.xpose.msra.mxu2 %v617_v33  ;;  %v191_v56 = vand.u32 4294901760, %v190_v50 }
  0x2a   :  { %144 = vmatpush.xpose.msra.mxu1 %v143_v46  ;;  %83 = vmatpush.xpose.msra.mxu0 %v624_v37  ;;  %v185_v46 = vand.u32 4294901760, %v184_v40 }
  0x2b   :  { %279 = vmatpush.xpose.msra.mxu3 %v624_v37 }
  0x2c   :  { %233 = vmatpush.xpose.msra.mxu2 %v636_v43 }
  0x2e   :  { %150 = vmatpush.xpose.msra.mxu1 %v149_v51  ;;  %85 = vmatpush.xpose.msra.mxu0 %v633_v42  ;;  %v195_v51 = vand.u32 4294901760, %v720_v45 }
  0x2f   :  { %281 = vmatpush.xpose.msra.mxu3 %v633_v42 }
  0x30   :  { %236 = vmatpush.xpose.msra.mxu2 %v648_v49 }
  0x32   :  { %156 = vmatpush.xpose.msra.mxu1 %v155_v58  ;;  %87 = vmatpush.xpose.msra.mxu0 %v645_v48  ;;  %v196_v58 = vsub.f32 %v720_v45, %v195_v51 }
  0x33   :  { %283 = vmatpush.xpose.msra.mxu3 %v645_v48 }
  0x34   :  { %239 = vmatpush.xpose.msra.mxu2 %v660_v55  ;;  %v197_v62 = vand.u32 4294901760, %v196_v58 }
  0x36   :  { %162 = vmatpush.xpose.msra.mxu1 %v161_v0  ;;  %89 = vmatpush.xpose.msra.mxu0 %v657_v54  ;;  %v202_v0 = vsub.f32 %v200_v52, %v201_v59 }
  0x37   :  { %285 = vmatpush.xpose.msra.mxu3 %v657_v54 }
  0x38   :  { %242 = vmatpush.xpose.msra.mxu2 %v672_v61  ;;  %v203_v1 = vand.u32 4294901760, %v202_v0 }
  0x3a   :  { %168 = vmatpush.xpose.msra.mxu1 %v167_v16  ;;  %91 = vmatpush.xpose.msra.mxu0 %v664_v57 }
  0x3b   :  { %287 = vmatpush.xpose.msra.mxu3 %v664_v57 }
  0x3c   :  { %245 = vmatpush.xpose.msra.mxu2 %v677_v63 }
  0x3e   :  { %174 = vmatpush.xpose.msra.mxu1 %v173_v28  ;;  %93 = vmatpush.xpose.msra.mxu0 %v684_v6 }
  0x3f   :  { %289 = vmatpush.xpose.msra.mxu3 %v684_v6 }
  0x40   :  { %248 = vmatpush.xpose.msra.mxu2 %v696_v22 }
  0x42   :  { %180 = vmatpush.xpose.msra.mxu1 %v179_v38  ;;  %95 = vmatpush.xpose.msra.mxu0 %v693_v20 }
  0x43   :  { %291 = vmatpush.xpose.msra.mxu3 %v693_v20 }
  0x44   :  { %251 = vmatpush.xpose.msra.mxu2 %v708_v34 }
  0x46   :  { %186 = vmatpush.xpose.msra.mxu1 %v185_v46  ;;  %97 = vmatpush.xpose.msra.mxu0 %v705_v32 }
  0x47   :  { %293 = vmatpush.xpose.msra.mxu3 %v705_v32 }
  0x48   :  { %254 = vmatpush.xpose.msra.mxu2 %v720_v45 }
  0x4a   :  { %192 = vmatpush.xpose.msra.mxu1 %v191_v56  ;;  %99 = vmatpush.xpose.msra.mxu0 %v717_v44 }
  0x4b   :  { %295 = vmatpush.xpose.msra.mxu3 %v717_v44 }
  0x4c   :  { %257 = vmatpush.xpose.msra.mxu2 %v200_v52 }
  0x4e   :  { %306 = vmatpush.xpose.msrb.mxu0 %v111_v12  ;;  %198 = vmatpush.xpose.msra.mxu1 %v197_v62  ;;  %v100_v12 = vand.u32 4294901760, %v51_v7 }
  0x50   :  { %v101_v8 = vsub.f32 %v51_v7, %v100_v12 }
  0x52   :  { %310 = vmatpush.xpose.msrb.mxu0 %v117_v13  ;;  %204 = vmatpush.xpose.msra.mxu1 %v203_v1 }
  0x53   :  { %260 = vmatmul.f32.vlgmr.msra.gmra.mxu2 %v101_v8 }
  0x55   :  { %206 = vmatmul.f32.vlgmr.msra.gmra.mxu1 %v100_v12 }
  0x56   :  { %373 = vmatpush.xpose.msrb.mxu1 %v555_v3  ;;  %314 = vmatpush.xpose.msrb.mxu0 %v123_v17  ;;  %v102_v3 = vand.u32 4294901760, %v101_v8 }
  0x58   :  { %299 = vmatmul.f32.vlgmr.msra.gmra.mxu3 %v102_v3 }
  0x5a   :  { %375 = vmatpush.xpose.msrb.mxu1 %v557_v4  ;;  %318 = vmatpush.xpose.msrb.mxu0 %v129_v24  ;;  %v103_v4 = vsub.f32 %v101_v8, %v102_v3 }
  0x5e   :  { %377 = vmatpush.xpose.msrb.mxu1 %v559_v5  ;;  %322 = vmatpush.xpose.msrb.mxu0 %v135_v30  ;;  %v104_v5 = vand.u32 4294901760, %v103_v4 }
  0x60   :  { %105 = vmatmul.f32.vlgmr.msra.gmra.mxu0 %v104_v5 }
  0x62   :  { %379 = vmatpush.xpose.msrb.mxu1 %v568_v9  ;;  %326 = vmatpush.xpose.msrb.mxu0 %v141_v36 }
  0x66   :  { %381 = vmatpush.xpose.msrb.mxu1 %v577_v14  ;;  %330 = vmatpush.xpose.msrb.mxu0 %v147_v39 }
  0x6a   :  { %383 = vmatpush.xpose.msrb.mxu1 %v592_v21  ;;  %334 = vmatpush.xpose.msrb.mxu0 %v153_v47 }
  0x6e   :  { %385 = vmatpush.xpose.msrb.mxu1 %v604_v27  ;;  %338 = vmatpush.xpose.msrb.mxu0 %v159_v53 }
  0x72   :  { %387 = vmatpush.xpose.msrb.mxu1 %v624_v37  ;;  %342 = vmatpush.xpose.msrb.mxu0 %v165_v60 }
  0x76   :  { %389 = vmatpush.xpose.msrb.mxu1 %v633_v42  ;;  %346 = vmatpush.xpose.msrb.mxu0 %v171_v2 }
  0x7a   :  { %391 = vmatpush.xpose.msrb.mxu1 %v645_v48  ;;  %350 = vmatpush.xpose.msrb.mxu0 %v177_v15 }
  0x7e   :  { %393 = vmatpush.xpose.msrb.mxu1 %v657_v54  ;;  %354 = vmatpush.xpose.msrb.mxu0 %v183_v29 }
  0x82   :  { %395 = vmatpush.xpose.msrb.mxu1 %v664_v57  ;;  %358 = vmatpush.xpose.msrb.mxu0 %v189_v41 }
  0x86   :  { %397 = vmatpush.xpose.msrb.mxu1 %v684_v6  ;;  %362 = vmatpush.xpose.msrb.mxu0 %v195_v51 }
  0x8a   :  { %399 = vmatpush.xpose.msrb.mxu1 %v693_v20  ;;  %366 = vmatpush.xpose.msrb.mxu0 %v201_v59 }
  0x8d   :  { %368 = vmatmul.f32.vlgmr.msrb.gmra.mxu0 %v100_v12 }
  0x8e   :  { %401 = vmatpush.xpose.msrb.mxu1 %v705_v32 }
  0x92   :  { %403 = vmatpush.xpose.msrb.mxu1 %v717_v44 }
  0x95   :  { %405 = vmatmul.f32.vlgmr.msrb.gmra.mxu1 %v100_v12 }
  0xd2   :  { %v207_v9 = vpop.f32.mrf.mxu1 }
  0xd6   :  { %v261_v14 = vpop.f32.mrf.mxu2 }
  0xdb   :  { %v300_v18 = vpop.f32.mrf.mxu3 }
  0xdd   :  { %v106_v10 = vpop.f32.mrf.mxu0 }
  0xde   :  { %v208_v13 = vadd.f32 %v207_v9, %v106_v10 }
  0xe0   :  { %v262_v17 = vadd.f32 %v261_v14, %v208_v13 }
  0xe2   :  { %v301_v21 = vadd.f32 %v300_v18, %v262_v17 }
 0x10a   :  { %v369_v24 = vpop.f32.mrf.mxu0 }
 0x10b   :  { %v370_v25 = vadd.f32 %v369_v24, %v301_v21 }
 0x112   :  { %v406_v27 = vpop.f32.mrf.mxu1 }
 0x113   :  { %v407_v30 = vadd.f32 %v406_v27, %v370_v25 }
 0x115   :  { %v419_v33 = vadd.f32 %v445_v31, %v407_v30 }
 0x117   :  { %420 = vst [vmem:[#allocation7] sm:$0xff] %v419_v33 }
 0x118   :  { %431 = dma.vmem_to_hbm [thread:$0]  %s427_s25, 128, %s429_s28, [#allocation4]  }
 0x119   :  { %522 = dma.done.wait [#allocation4], 128  }
 0x11a   :  { %523 = vsyncadd [#allocation4], 4294967168 }
 0x11b   :  { %436 = vsyncpa [#allocation3], 1 }
 0x11c   :  { %437 = vsyncpa [#allocation6], 1 }
 0x11d   :  { %438 = vsyncpa [#allocation4], 1 }

</bundles_post_ra>
